<compile_context>
chip_gen: v5e
topology: v5e:2x2
jax: 0.10.0
libtpu: 0.0.40
codegen_flags: <defaults>
</compile_context>

<pallas_src>
import jax
import jax.numpy as jnp
from jax.experimental import pallas as pl
from jax.experimental.pallas import tpu as pltpu

BN_EPS = 1e-5
LANE = 128


def _round_up(x, m):
    return (x + m - 1) // m * m


# ---------------------------------------------------------------------------
# Kernel body: (x @ w1_folded + b1_folded) -> ReLU -> @ w2 + b2
# ---------------------------------------------------------------------------
def simple_dnn_kernel(x_ref, w1_ref, b1_ref, w2_ref, b2_ref, o_ref):
    # x arrives f32 / lane-unpadded; cast to bf16 in-register (hides under MXU).
    x = x_ref[...].astype(jnp.bfloat16)
    # Layer 1: Linear with eval-mode BatchNorm pre-folded into w1/b1.
    h = jnp.dot(x, w1_ref[...], preferred_element_type=jnp.float32)
    h = jnp.maximum(h + b1_ref[...], 0.0)          # Dropout(eval)=identity; ReLU
    # Head: Linear (bf16 operands, f32 accumulation).
    y = jnp.dot(h.astype(jnp.bfloat16), w2_ref[...],
                preferred_element_type=jnp.float32)
    o_ref[...] = (y + b2_ref[...]).astype(o_ref.dtype)


# ---------------------------------------------------------------------------
# One-time parameter preparation (do NOT call per forward).
# ---------------------------------------------------------------------------
def prepare_params(params):
    """Fold eval BatchNorm into Linear1, pad lane dims (H, D_out) to 128,
    cast weights to bf16. Fold is done in f32; cast happens last."""
    scale = params["gamma"] * jax.lax.rsqrt(params["var"] + BN_EPS)      # (1, H)
    w1_f = params["w1"] * scale                                          # (D_in, H)
    b1_f = (params["b1"] - params["mean"]) * scale + params["beta"]      # (1, H)

    D_in, H = w1_f.shape
    D_out = params["w2"].shape[1]
    H_p = _round_up(H, LANE)
    D_out_p = _round_up(D_out, LANE)

    pad_cols = lambda a, c: jnp.pad(a, ((0, 0), (0, c - a.shape[1])))
    w1_p = pad_cols(w1_f, H_p).astype(jnp.bfloat16)                  # (D_in, H_p)
    b1_p = pad_cols(b1_f, H_p)                                       # f32
    w2_p = jnp.pad(params["w2"],
                   ((0, H_p - H), (0, D_out_p - D_out))).astype(jnp.bfloat16)
    b2_p = pad_cols(params["b2"], D_out_p)                           # f32
    return {"w1": w1_p, "b1": b1_p, "w2": w2_p, "b2": b2_p, "d_out": int(D_out)}


# ---------------------------------------------------------------------------
# Generation-aware resource sizing.
# ---------------------------------------------------------------------------
def _vmem_budget():
    try:
        cap = int(pltpu.get_tpu_info().vmem_capacity_bytes)
    except Exception:
        cap = 64 * 1024 * 1024                       # assume smallest (v7x)
    if cap >= 128 * 1024 * 1024:                     # v5e / v6e
        return 96 * 1024 * 1024, 1024
    return 48 * 1024 * 1024, 512                     # v7x: 64 MiB per TC


def _choose_batch_tile(B, D_in, H_p, D_out_p, weight_bytes, vmem_limit, tb_cap):
    # Streamed VMEM bytes per batch row: double-buffered f32 x/out tiles plus
    # f32 hidden activations and bf16 casts (single copies).
    per_row = 2 * 4 * (D_in + D_out_p) + 4 * H_p + 2 * (D_in + H_p)
    budget = vmem_limit - weight_bytes - (4 << 20)   # 4 MiB headroom
    tb = tb_cap
    if budget > 0:
        tb = min(tb, max(16, (budget // per_row) // 16 * 16))
    # Keep >=2 grid steps when there is enough work (v7x 2-TC sharding) and
    # keep B_p close to B (avoid near-2x padded work).
    n_tiles = pl.cdiv(B, tb)
    if n_tiles == 1 and B >= 32:
        n_tiles = 2
    tb = min(tb, _round_up(pl.cdiv(B, n_tiles), 16))
    return tb, _round_up(B, tb)


# ---------------------------------------------------------------------------
# Forward wrapper.
# ---------------------------------------------------------------------------
def simple_dnn_forward(x, prep, *, out_dtype=jnp.float32):
    """x: (B, D_in) f32. prep: output of prepare_params() (call it once)."""
    B, D_in = x.shape
    w1, b1, w2, b2 = prep["w1"], prep["b1"], prep["w2"], prep["b2"]
    d_out = prep["d_out"]
    assert w1.shape[0] == D_in, "input_dim mismatch with prepared params"
    H_p, D_out_p = w1.shape[1], w2.shape[1]

    vmem_limit, tb_cap = _vmem_budget()
    weight_bytes = w1.size * 2 + w2.size * 2 + (b1.size + b2.size) * 4
    # TODO(synk): if bf16 weights exceed the VMEM budget (very large hidden dims,
    # esp. on v7x's 64 MiB), add a K/D_out-tiled path with an f32 accumulator
    # instead of assuming fully resident weights.

    if B < 32:
        # Tiny batch: launch/overhead-bound. One un-gridded call, everything
        # VMEM resident, no batch padding, no pipelining machinery.
        out = pl.pallas_call(
            simple_dnn_kernel,
            out_shape=jax.ShapeDtypeStruct((B, D_out_p), out_dtype),
            compiler_params=pltpu.CompilerParams(vmem_limit_bytes=vmem_limit),
        )(x, w1, b1, w2, b2)
        return out[:, :d_out]

    TB, B_p = _choose_batch_tile(B, D_in, H_p, D_out_p, weight_bytes,
                                 vmem_limit, tb_cap)
    if B_p != B:
        x = jnp.pad(x, ((0, B_p - B), (0, 0)))       # batch-pad only when needed

    def _resident(shape):
        # Constant index_map -> VMEM-resident across the grid; single-buffered
        # (default double buffering of static weights is dead VMEM).
        return pl.BlockSpec(shape, lambda i: (0, 0),
                            pipeline_mode=pl.Buffered(1))

    out_bytes = jnp.dtype(out_dtype).itemsize
    cost = pl.CostEstimate(
        flops=2 * B_p * (D_in * H_p + H_p * D_out_p),
        transcendentals=0,
        bytes_accessed=(B_p * D_in * 4 + weight_bytes
                        + B_p * D_out_p * out_bytes),
    )

    out = pl.pallas_call(
        simple_dnn_kernel,
        out_shape=jax.ShapeDtypeStruct((B_p, D_out_p), out_dtype),
        grid=(B_p // TB,),
        in_specs=[
            pl.BlockSpec((TB, D_in), lambda i: (i, 0)),   # x tile (streamed, f32)
            _resident((D_in, H_p)),                       # w1 (BN folded, bf16)
            _resident((1, H_p)),                          # b1 (folded, f32)
            _resident((H_p, D_out_p)),                    # w2 (bf16)
            _resident((1, D_out_p)),                      # b2 (f32)
        ],
        out_specs=pl.BlockSpec((TB, D_out_p), lambda i: (i, 0)),
        compiler_params=pltpu.CompilerParams(
            dimension_semantics=("parallel",),
            vmem_limit_bytes=vmem_limit,
        ),
        cost_estimate=cost,
    )(x, w1, b1, w2, b2)

    return out[:B, :d_out]


# ---------------------------------------------------------------------------
# Test helpers.
# ---------------------------------------------------------------------------
def init_params(key, input_dim, hidden_dim, output_dim):
    k1, k2, k3, k4, kg, kb, km, kv = jax.random.split(key, 8)
    s1 = 1.0 / jnp.sqrt(input_dim)
    s2 = 1.0 / jnp.sqrt(hidden_dim)
    return {
        "w1": jax.random.uniform(k1, (input_dim, hidden_dim), jnp.float32, -s1, s1),
        "b1": jax.random.uniform(k2, (1, hidden_dim), jnp.float32, -s1, s1),
        "gamma": 1.0 + 0.1 * jax.random.normal(kg, (1, hidden_dim), jnp.float32),
        "beta": 0.1 * jax.random.normal(kb, (1, hidden_dim), jnp.float32),
        "mean": 0.1 * jax.random.normal(km, (1, hidden_dim), jnp.float32),
        "var": jnp.abs(1.0 + 0.1 * jax.random.normal(kv, (1, hidden_dim), jnp.float32)),
        "w2": jax.random.uniform(k3, (hidden_dim, output_dim), jnp.float32, -s2, s2),
        "b2": jax.random.uniform(k4, (1, output_dim), jnp.float32, -s2, s2),
    }


def reference_forward(x, p):
    """Pure f32 eval-mode reference matching the PyTorch module's forward."""
    h = x @ p["w1"] + p["b1"]
    h = (h - p["mean"]) * jax.lax.rsqrt(p["var"] + BN_EPS) * p["gamma"] + p["beta"]
    h = jnp.maximum(h, 0.0)   # dropout (eval) = identity
    return h @ p["w2"] + p["b2"]


if __name__ == "__main__":
    key = jax.random.PRNGKey(0)
    kx1, kx2, kp1, kp2 = jax.random.split(key, 4)

    # Case 1: tiny shape -> un-gridded fast path.
    b, din, hid, dout = 8, 32, 64, 16
    x1 = jax.random.normal(kx1, (b, din), jnp.float32)
    p1 = init_params(kp1, din, hid, dout)
    prep1 = prepare_params(p1)                 # one-time weight prep
    y1 = jax.block_until_ready(simple_dnn_forward(x1, prep1))
    r1 = reference_forward(x1, p1)
    assert y1.shape == (b, dout)
    assert jnp.allclose(y1, r1, atol=5e-2, rtol=3e-2), "tiny-path mismatch"

    # Case 2: larger batch -> gridded, batch-parallel path (Buffered(1) weights,
    # batch padding, >=2 grid steps).
    b2_, din2, hid2, dout2 = 200, 48, 96, 24
    x2 = jax.random.normal(kx2, (b2_, din2), jnp.float32)
    p2 = init_params(kp2, din2, hid2, dout2)
    prep2 = prepare_params(p2)
    y2 = jax.block_until_ready(simple_dnn_forward(x2, prep2))
    r2 = reference_forward(x2, p2)
    assert y2.shape == (b2_, dout2)
    assert jnp.allclose(y2, r2, atol=5e-2, rtol=3e-2), "grid-path mismatch"

    print("KERNEL_OK")
</pallas_src>

<mosaic_0001>
module attributes {stable_mosaic.version = 11 : i64} {
  func.func @simple_dnn_kernel(%arg0: memref<8x32xf32, #tpu.memory_space<vmem>>, %arg1: memref<32x128xbf16, #tpu.memory_space<vmem>>, %arg2: memref<1x128xf32, #tpu.memory_space<vmem>>, %arg3: memref<128x128xbf16, #tpu.memory_space<vmem>>, %arg4: memref<1x128xf32, #tpu.memory_space<vmem>>, %arg5: memref<8x128xf32, #tpu.memory_space<vmem>>) attributes {dimension_semantics = [], scalar_prefetch = 0 : i64, scratch_operands = 0 : i64, tpu.core_type = #tpu.core_type<tc>} {
    %c0 = arith.constant 0 : index
    %c0_0 = arith.constant 0 : index
    %0 = vector.load %arg0[%c0, %c0_0] : memref<8x32xf32, #tpu.memory_space<vmem>>, vector<8x32xf32>
    %1 = arith.truncf %0 : vector<8x32xf32> to vector<8x32xbf16>
    %c0_1 = arith.constant 0 : index
    %c0_2 = arith.constant 0 : index
    %2 = vector.load %arg1[%c0_1, %c0_2] : memref<32x128xbf16, #tpu.memory_space<vmem>>, vector<32x128xbf16>
    %cst = arith.constant dense<0.000000e+00> : vector<8x128xf32>
    %3 = tpu.matmul %1, %2, %cst {dimension_numbers = #tpu.dot_dimension_numbers<[1], [0], [0], [1], [0, 0, 1, 1], [], []>} : vector<8x32xbf16>, vector<32x128xbf16>, vector<8x128xf32> -> vector<8x128xf32>
    %c0_3 = arith.constant 0 : index
    %c0_4 = arith.constant 0 : index
    %4 = vector.load %arg2[%c0_3, %c0_4] : memref<1x128xf32, #tpu.memory_space<vmem>>, vector<1x128xf32>
    %5 = vector.broadcast %4 : vector<1x128xf32> to vector<8x128xf32>
    %6 = arith.addf %3, %5 : vector<8x128xf32>
    %cst_5 = arith.constant 0.000000e+00 : f32
    %7 = vector.broadcast %cst_5 : f32 to vector<8x128xf32>
    %8 = arith.maximumf %6, %7 : vector<8x128xf32>
    %9 = arith.truncf %8 : vector<8x128xf32> to vector<8x128xbf16>
    %c0_6 = arith.constant 0 : index
    %c0_7 = arith.constant 0 : index
    %10 = vector.load %arg3[%c0_6, %c0_7] : memref<128x128xbf16, #tpu.memory_space<vmem>>, vector<128x128xbf16>
    %cst_8 = arith.constant dense<0.000000e+00> : vector<8x128xf32>
    %11 = tpu.matmul %9, %10, %cst_8 {dimension_numbers = #tpu.dot_dimension_numbers<[1], [0], [0], [1], [0, 0, 1, 1], [], []>} : vector<8x128xbf16>, vector<128x128xbf16>, vector<8x128xf32> -> vector<8x128xf32>
    %c0_9 = arith.constant 0 : index
    %c0_10 = arith.constant 0 : index
    %12 = vector.load %arg4[%c0_9, %c0_10] : memref<1x128xf32, #tpu.memory_space<vmem>>, vector<1x128xf32>
    %13 = vector.broadcast %12 : vector<1x128xf32> to vector<8x128xf32>
    %14 = arith.addf %11, %13 : vector<8x128xf32>
    %c0_11 = arith.constant 0 : index
    %c0_12 = arith.constant 0 : index
    %15 = vector.load %arg5[%c0_11, %c0_12] : memref<8x128xf32, #tpu.memory_space<vmem>>, vector<8x128xf32>
    tpu.vector_store %arg5[%c0_11, %c0_12], %14 {strides = array<i32>} : memref<8x128xf32, #tpu.memory_space<vmem>>, vector<8x128xf32>,
    return
  }
}

</mosaic_0001>

<bundles_post_ra>
// kernel: tpu_custom_call.1
= control target key start
LH: loop header
LB: loop body
LE: loop exit
PB: predicated region body
PF: predicated region fallthrough
CT: control target
= control target key end

     0   :  { %10 = vsyncpa [#allocation3], 0  ;;  %s423_s0 = inlined_call_operand.hbm [shape: f32[8,32], index: 0, kind: input, shape index: {}]   ;;  %s424_s1 = inlined_call_operand.hbm [shape: bf16[32,128], index: 1, kind: input, shape index: {}]   ;;  %s425_s2 = inlined_call_operand.vmem [shape: f32[1,128], index: 2, kind: input, shape index: {}]   ;;  %s426_s3 = inlined_call_operand.hbm [shape: bf16[128,128], index: 3, kind: input, shape index: {}]   ;;  %s427_s4 = inlined_call_operand.vmem [shape: f32[1,128], index: 4, kind: input, shape index: {}]   ;;  %s428_s5 = inlined_call_operand.hbm [shape: f32[8,128], index: 5, kind: output, shape index: {}]  }
   0x1   :  { %11 = vsyncpa [#allocation6], 0  ;;  %s28_s20 = sshll.u32 %s424_s1, 4  ;;  %s29_s20 = int_to_ptr.hbm [resolvable:$true] %s28_s20 }
   0x2   :  { %12 = vsyncpa [#allocation4], 0  ;;  %s369_s21 = smov [#allocation5]   ;;  %s18_s25 = sshll.u32 %s423_s0, 4  ;;  %s19_s25 = int_to_ptr.hbm [resolvable:$true] %s18_s25 }
   0x3   :  { %s30_s22 = sshll.u32 %s369_s21, 4  ;;  %s370_s26 = smov 64   ;;  %s31_s22 = int_to_ptr.vmem [resolvable:$true] %s30_s22 }
   0x4   :  { %s371_s27 = smov 4   ;;  %s372_s28 = smov [#allocation2]  }
   0x5   :  { %36 = dma.hbm_to_vmem [thread:$0]  %s29_s20, 256, %s31_s22, [#allocation6], %s370_s26, %s370_s26, %s371_s27  }
   0x6   :  { %s20_s29 = sshll.u32 %s372_s28, 4  ;;  %s43_s7 = sshll.u32 %s426_s3, 4  ;;  %s21_s29 = int_to_ptr.vmem [resolvable:$true] %s20_s29  ;;  %s44_s7 = int_to_ptr.hbm [resolvable:$true] %s43_s7 }
   0x7   :  { %23 = dma.hbm_to_vmem [thread:$0]  %s19_s25, 128, %s21_s29, [#allocation3]  }
   0x8   :  { %s373_s1 = smov [#allocation7]  }
   0x9   :  { %s45_s8 = sshll.u32 %s373_s1, 4  ;;  %s46_s8 = int_to_ptr.vmem [resolvable:$true] %s45_s8 }
   0xa   :  { %51 = dma.hbm_to_vmem [thread:$0]  %s44_s7, 1024, %s46_s8, [#allocation6], %s370_s26, %s370_s26, %s371_s27  }
   0xb   :  { %363 = dma.done.wait [#allocation3], 128  }
   0xc   :  { %364 = vsyncadd [#allocation3], 4294967168 }
   0xd   :  { %365 = dma.done.wait [#allocation6], 1280  }
   0xe   :  { %366 = vsyncadd [#allocation6], 4294966016  ;;  %v250_v0 = vld [vmem:[#allocation5 + $0x8] sm:$0xff]  ;;  %v249_v2 = vld [vmem:[#allocation5] sm:$0xff]  ;;  %vm89_vm0 = vcmask 261120   ;;  %s374_s11 = smov [#allocation8]  }
   0xf   :  { %v258_v1 = vld [vmem:[#allocation7 + $0x38] sm:$0xff]  ;;  %99 = vmatpush.bf16.msra.mxu0 %v250_v0  ;;  %v67_v3 = vld [vmem:[#allocation2] sm:$0xff]  ;;  %v257_v4 = vld [vmem:[#allocation7 + $0x30] sm:$0xff]  ;;  %s195_s12 = sshll.u32 %s374_s11, 4  ;;  %s197_s15 = sshll.u32 %s428_s5, 4  ;;  %s196_s12 = int_to_ptr.vmem [resolvable:$true] %s195_s12  ;;  %s198_s15 = int_to_ptr.hbm [resolvable:$true] %s197_s15 }
  0x10   :  { %176 = vmatpush.bf16.msra.mxu1 %v258_v1  ;;  %v68_v5 = vpack.c.bf16 %v67_v3, %v67_v3  ;;  %v256_v6 = vld [vmem:[#allocation7 + $0x28] sm:$0xff]  ;;  %v255_v7 = vld [vmem:[#allocation7 + $0x20] sm:$0xff]  ;;  %v254_v8 = vld [vmem:[#allocation7 + $0x18] sm:$0xff] }
  0x11   :  { %v253_v9 = vld [vmem:[#allocation7 + $0x10] sm:$0xff]  ;;  %v252_v10 = vld [vmem:[#allocation7 + $0x8] sm:$0xff]  ;;  %v251_v11 = vld [vmem:[#allocation7] sm:$0xff] }
  0x12   :  { %v265_v12 = vld [vmem:[%s425_s2] ss:$0 sm:$0xff] }
  0x13   :  { %100 = vmatpush.bf16.msra.mxu0 %v249_v2  ;;  %v266_v18 = vld [vmem:[%s427_s4] ss:$0 sm:$0xff] }
  0x14   :  { %177 = vmatpush.bf16.msra.mxu1 %v257_v4 }
  0x16   :  { %216 = vmatmul.msk.bf16.vlgmr.msra.gmra.mxu0 %vm89_vm0, %v68_v5 }
  0x18   :  { %178 = vmatpush.bf16.msra.mxu1 %v256_v6 }
  0x1c   :  { %179 = vmatpush.bf16.msra.mxu1 %v255_v7 }
  0x20   :  { %180 = vmatpush.bf16.msra.mxu1 %v254_v8 }
  0x24   :  { %181 = vmatpush.bf16.msra.mxu1 %v253_v9 }
  0x28   :  { %182 = vmatpush.bf16.msra.mxu1 %v252_v10 }
  0x2c   :  { %183 = vmatpush.bf16.msra.mxu1 %v251_v11 }
  0x93   :  { %v102_v13 = vpop.f32.mrf.mxu0 }
  0x94   :  { %v103_v14 = vadd.f32 %v265_v12, %v102_v13 }
  0x96   :  { %v106_v15 = vmax.f32 %v103_v14, 0.0 }
  0x98   :  { %v107_v16 = vpack.c.bf16 %v106_v15, %v106_v15 }
  0x9a   :  { %184 = vmatmul.bf16.vlgmr.msra.gmra.mxu1 %v107_v16 }
  0x9b   :  { %v104_v17 = vpop.f32.mrf.mxu0 }
 0x117   :  { %v185_v19 = vpop.f32.mrf.mxu1 }
 0x118   :  { %v186_v20 = vadd.f32 %v266_v18, %v185_v19 }
 0x11a   :  { %189 = vst [vmem:[#allocation8] sm:$0xff] %v186_v20 }
 0x11b   :  { %200 = dma.vmem_to_hbm [thread:$0]  %s196_s12, 128, %s198_s15, [#allocation4]  }
 0x11f   :  { %v187_v21 = vpop.f32.mrf.mxu1 }
 0x120   :  { %367 = dma.done.wait [#allocation4], 128  }
 0x121   :  { %368 = vsyncadd [#allocation4], 4294967168 }
 0x122   :  { %205 = vsyncpa [#allocation3], 1 }
 0x123   :  { %206 = vsyncpa [#allocation6], 1 }
 0x124   :  { %207 = vsyncpa [#allocation4], 1 }

</bundles_post_ra>
